<compile_context>
chip_gen: v5e
topology: v5e:2x2
jax: 0.10.0
libtpu: 0.0.40
codegen_flags: <defaults>
</compile_context>

<pallas_src>
import jax
import jax.numpy as jnp
from jax.experimental import pallas as pl
from jax.experimental.pallas import tpu as pltpu

LANE = 128        # lane width (last dim)
SUBLANE_PACK = 16 # bf16-friendly sublane multiple (also fine for f32)


def _round_up(x, m):
    return ((x + m - 1) // m) * m


def ddpg_actor_kernel(obs_ref, w1_ref, b1_ref, w2_ref, b2_ref, w3_ref, b3_ref,
                      out_ref):
    # fc1 + tanh  (matmul operands may be bf16; accumulate/bias/tanh in f32)
    x = obs_ref[...]
    h1 = jnp.tanh(
        jnp.dot(x, w1_ref[...], preferred_element_type=jnp.float32)
        + b1_ref[...])
    # fc2 + tanh
    h2 = jnp.tanh(
        jnp.dot(h1.astype(w2_ref.dtype), w2_ref[...],
                preferred_element_type=jnp.float32)
        + b2_ref[...])
    # fc3 (no activation)
    action = (jnp.dot(h2.astype(w3_ref.dtype), w3_ref[...],
                      preferred_element_type=jnp.float32)
              + b3_ref[...])
    out_ref[...] = action.astype(out_ref.dtype)


def prepare_params(w1, b1, w2, b2, w3, b3, *, compute_dtype=jnp.bfloat16):
    """One-time weight prep: pad hidden/action dims to 128 lanes and cast
    weights to the MXU operand dtype.  Biases stay f32 (added post-accumulate).
    w1's first dim is left at obs_dim (no lane inflation on the K axis)."""
    obs_dim, hidden = w1.shape
    n_action = w3.shape[1]
    d_h = _round_up(hidden, LANE)
    d_out = _round_up(n_action, LANE)

    def pad2(a, r, c, dtype):
        return jnp.pad(a, ((0, r - a.shape[0]), (0, c - a.shape[1]))).astype(dtype)

    return dict(
        w1=pad2(w1, obs_dim, d_h, compute_dtype),
        b1=pad2(b1, 1, d_h, jnp.float32),
        w2=pad2(w2, d_h, d_h, compute_dtype),
        b2=pad2(b2, 1, d_h, jnp.float32),
        w3=pad2(w3, d_h, d_out, compute_dtype),
        b3=pad2(b3, 1, d_out, jnp.float32),
        n_action=n_action,
        obs_dim=obs_dim,
    )


def ddpg_actor_forward(obs, params, *, block_batch=512,
                       out_dtype=jnp.float32, single_buffer_weights=True):
    """Fused DDPG actor forward.

    obs:     (B, obs_dim) f32 (cast to the weights' compute dtype per call)
    params:  output of prepare_params()
    """
    w1, b1 = params["w1"], params["b1"]
    w2, b2 = params["w2"], params["b2"]
    w3, b3 = params["w3"], params["b3"]
    n_action = params["n_action"]

    compute_dtype = w1.dtype
    B, obs_dim = obs.shape
    assert obs_dim == params["obs_dim"], "obs_dim mismatch with prepared params"
    d_h = w1.shape[1]
    d_out = w3.shape[1]

    # --- batch tiling: minimize tail padding, keep >=2 steps when B > one
    #     sublane pack so the "parallel" axis can use both v7x TensorCores ----
    if B <= SUBLANE_PACK:
        num_tiles = 1
    else:
        num_tiles = max(2, -(-B // block_batch))
    tb = _round_up(-(-B // num_tiles), SUBLANE_PACK)
    tb = min(tb, _round_up(B, SUBLANE_PACK))
    b_pad = _round_up(B, tb)
    grid = (b_pad // tb,)

    # --- per-call prep: only pad the batch axis of obs (no lane inflation) ---
    obs_p = jnp.pad(obs, ((0, b_pad - B), (0, 0))).astype(compute_dtype)

    # --- advisory cost estimate (actual byte counts, not padded-f32) ---------
    flops = 2 * b_pad * (obs_dim * d_h + d_h * d_h + d_h * d_out)
    transcendentals = 2 * b_pad * d_h  # two tanh layers
    in_bytes = (obs_p.size * obs_p.dtype.itemsize
                + sum(a.size * a.dtype.itemsize
                      for a in (w1, b1, w2, b2, w3, b3)))
    out_bytes = b_pad * d_out * jnp.dtype(out_dtype).itemsize
    cost = pl.CostEstimate(flops=flops, transcendentals=transcendentals,
                           bytes_accessed=in_bytes + out_bytes)

    # --- explicit VMEM budget (v5e scoped default is only 16 MiB) ------------
    weight_bytes = 2 * sum(a.size * a.dtype.itemsize
                           for a in (w1, b1, w2, b2, w3, b3))
    act_bytes = 2 * (tb * obs_dim * jnp.dtype(compute_dtype).itemsize
                     + tb * d_out * jnp.dtype(out_dtype).itemsize)
    vmem_limit = int(min(max(2 * (weight_bytes + act_bytes) + (4 << 20),
                             32 << 20), 64 << 20))

    obs_spec = pl.BlockSpec((tb, obs_dim), lambda i: (i, 0))
    out_spec = pl.BlockSpec((tb, d_out), lambda i: (i, 0))

    def _call(weight_pipeline_mode):
        if weight_pipeline_mode is None:
            def resident(shape):
                return pl.BlockSpec(shape, lambda i: (0, 0))
        else:
            def resident(shape):
                return pl.BlockSpec(shape, lambda i: (0, 0),
                                    pipeline_mode=weight_pipeline_mode)
        return pl.pallas_call(
            ddpg_actor_kernel,
            out_shape=jax.ShapeDtypeStruct((b_pad, d_out), out_dtype),
            grid=grid,
            in_specs=[obs_spec,
                      resident((obs_dim, d_h)), resident((1, d_h)),
                      resident((d_h, d_h)), resident((1, d_h)),
                      resident((d_h, d_out)), resident((1, d_out))],
            out_specs=out_spec,
            compiler_params=pltpu.CompilerParams(
                dimension_semantics=("parallel",),
                vmem_limit_bytes=vmem_limit),
            cost_estimate=cost,
        )(obs_p, w1, b1, w2, b2, w3, b3)

    if single_buffer_weights:
        # Constant index_map -> one VMEM copy of each weight is enough.
        try:
            out_padded = _call(pl.Buffered(1))
        except Exception:
            out_padded = _call(None)   # fall back to default double-buffering
    else:
        out_padded = _call(None)

    # Strip batch/lane padding back to the logical action shape.
    return out_padded[:B, :n_action]


def init_params(key, obs_dim, hidden_dim, n_action):
    """Deterministic synthetic init (PyTorch-Linear-like uniform fan-in)."""
    ks = jax.random.split(key, 6)

    def linear(kw, kb, fan_in, fan_out):
        bound = 1.0 / jnp.sqrt(fan_in)
        # weight stored transposed relative to torch: (in, out)
        w = jax.random.uniform(kw, (fan_in, fan_out), jnp.float32,
                               minval=-bound, maxval=bound)
        b = jax.random.uniform(kb, (1, fan_out), jnp.float32,
                               minval=-bound, maxval=bound)
        return w, b

    w1, b1 = linear(ks[0], ks[1], obs_dim, hidden_dim)
    w2, b2 = linear(ks[2], ks[3], hidden_dim, hidden_dim)
    w3, b3 = linear(ks[4], ks[5], hidden_dim, n_action)
    return w1, b1, w2, b2, w3, b3


if __name__ == "__main__":
    # Small shapes consistent with the module: obs_shape=(16,), hidden_dim=32,
    # n_action=8, batch=8.
    batch, obs_dim, hidden_dim, n_action = 8, 16, 32, 8

    key = jax.random.PRNGKey(0)
    k_obs, k_par = jax.random.split(key)
    obs = jax.random.normal(k_obs, (batch, obs_dim), jnp.float32)
    raw = init_params(k_par, obs_dim, hidden_dim, n_action)

    # Reference in plain JAX (same math).
    w1, b1, w2, b2, w3, b3 = raw
    ref = jnp.tanh(obs @ w1 + b1)
    ref = jnp.tanh(ref @ w2 + b2)
    ref = ref @ w3 + b3

    # f32 MXU-operand path (exact at these shapes).
    params_f32 = prepare_params(*raw, compute_dtype=jnp.float32)
    act_f32 = jax.block_until_ready(ddpg_actor_forward(obs, params_f32))
    assert act_f32.shape == (batch, n_action)
    assert jnp.allclose(act_f32, ref, atol=1e-5), "f32 mismatch vs reference"

    # Default bf16 MXU-operand path (f32 accumulate/bias/tanh) — all TPU gens.
    params_bf16 = prepare_params(*raw)  # compute_dtype defaults to bfloat16
    act_bf16 = jax.block_until_ready(ddpg_actor_forward(obs, params_bf16))
    assert jnp.allclose(act_bf16, ref, atol=5e-2), "bf16 mismatch vs reference"

    # Optional bf16 output (halves the writeback stream).
    act_bf16_out = jax.block_until_ready(
        ddpg_actor_forward(obs, params_bf16, out_dtype=jnp.bfloat16))
    assert act_bf16_out.dtype == jnp.bfloat16
    assert jnp.allclose(act_bf16_out.astype(jnp.float32), ref, atol=6e-2), \
        "bf16-out mismatch vs reference"

    print("KERNEL_OK")
</pallas_src>

<mosaic_0001>
module attributes {stable_mosaic.version = 11 : i64} {
  func.func @ddpg_actor_kernel(%arg0: i32, %arg1: memref<16x16xf32, #tpu.memory_space<vmem>>, %arg2: memref<16x128xf32, #tpu.memory_space<vmem>>, %arg3: memref<1x128xf32, #tpu.memory_space<vmem>>, %arg4: memref<128x128xf32, #tpu.memory_space<vmem>>, %arg5: memref<1x128xf32, #tpu.memory_space<vmem>>, %arg6: memref<128x128xf32, #tpu.memory_space<vmem>>, %arg7: memref<1x128xf32, #tpu.memory_space<vmem>>, %arg8: memref<16x128xf32, #tpu.memory_space<vmem>>) attributes {dimension_semantics = [#tpu.dimension_semantics<parallel>], iteration_bounds = array<i64: 1>, scalar_prefetch = 0 : i64, scratch_operands = 0 : i64, tpu.core_type = #tpu.core_type<tc>, window_params = [{transform_indices = @transform_0, window_bounds = array<i64: 16, 16>}, {pipeline_mode = #tpu.pipeline_mode<synchronous>, transform_indices = @transform_1, window_bounds = array<i64: 16, 128>}, {pipeline_mode = #tpu.pipeline_mode<synchronous>, transform_indices = @transform_2, window_bounds = array<i64: 1, 128>}, {pipeline_mode = #tpu.pipeline_mode<synchronous>, transform_indices = @transform_3, window_bounds = array<i64: 128, 128>}, {pipeline_mode = #tpu.pipeline_mode<synchronous>, transform_indices = @transform_4, window_bounds = array<i64: 1, 128>}, {pipeline_mode = #tpu.pipeline_mode<synchronous>, transform_indices = @transform_5, window_bounds = array<i64: 128, 128>}, {pipeline_mode = #tpu.pipeline_mode<synchronous>, transform_indices = @transform_6, window_bounds = array<i64: 1, 128>}, {transform_indices = @transform_7, window_bounds = array<i64: 16, 128>}]} {
    %c0 = arith.constant 0 : index
    %c0_0 = arith.constant 0 : index
    %0 = vector.load %arg1[%c0, %c0_0] : memref<16x16xf32, #tpu.memory_space<vmem>>, vector<16x16xf32>
    %c0_1 = arith.constant 0 : index
    %c0_2 = arith.constant 0 : index
    %1 = vector.load %arg2[%c0_1, %c0_2] : memref<16x128xf32, #tpu.memory_space<vmem>>, vector<16x128xf32>
    %cst = arith.constant dense<0.000000e+00> : vector<16x128xf32>
    %2 = tpu.matmul %0, %1, %cst {dimension_numbers = #tpu.dot_dimension_numbers<[1], [0], [0], [1], [0, 0, 1, 1], [], []>} : vector<16x16xf32>, vector<16x128xf32>, vector<16x128xf32> -> vector<16x128xf32>
    %c0_3 = arith.constant 0 : index
    %c0_4 = arith.constant 0 : index
    %3 = vector.load %arg3[%c0_3, %c0_4] : memref<1x128xf32, #tpu.memory_space<vmem>>, vector<1x128xf32>
    %4 = vector.broadcast %3 : vector<1x128xf32> to vector<16x128xf32>
    %5 = arith.addf %2, %4 : vector<16x128xf32>
    %6 = math.tanh %5 : vector<16x128xf32>
    %c0_5 = arith.constant 0 : index
    %c0_6 = arith.constant 0 : index
    %7 = vector.load %arg4[%c0_5, %c0_6] : memref<128x128xf32, #tpu.memory_space<vmem>>, vector<128x128xf32>
    %cst_7 = arith.constant dense<0.000000e+00> : vector<16x128xf32>
    %8 = tpu.matmul %6, %7, %cst_7 {dimension_numbers = #tpu.dot_dimension_numbers<[1], [0], [0], [1], [0, 0, 1, 1], [], []>} : vector<16x128xf32>, vector<128x128xf32>, vector<16x128xf32> -> vector<16x128xf32>
    %c0_8 = arith.constant 0 : index
    %c0_9 = arith.constant 0 : index
    %9 = vector.load %arg5[%c0_8, %c0_9] : memref<1x128xf32, #tpu.memory_space<vmem>>, vector<1x128xf32>
    %10 = vector.broadcast %9 : vector<1x128xf32> to vector<16x128xf32>
    %11 = arith.addf %8, %10 : vector<16x128xf32>
    %12 = math.tanh %11 : vector<16x128xf32>
    %c0_10 = arith.constant 0 : index
    %c0_11 = arith.constant 0 : index
    %13 = vector.load %arg6[%c0_10, %c0_11] : memref<128x128xf32, #tpu.memory_space<vmem>>, vector<128x128xf32>
    %cst_12 = arith.constant dense<0.000000e+00> : vector<16x128xf32>
    %14 = tpu.matmul %12, %13, %cst_12 {dimension_numbers = #tpu.dot_dimension_numbers<[1], [0], [0], [1], [0, 0, 1, 1], [], []>} : vector<16x128xf32>, vector<128x128xf32>, vector<16x128xf32> -> vector<16x128xf32>
    %c0_13 = arith.constant 0 : index
    %c0_14 = arith.constant 0 : index
    %15 = vector.load %arg7[%c0_13, %c0_14] : memref<1x128xf32, #tpu.memory_space<vmem>>, vector<1x128xf32>
    %16 = vector.broadcast %15 : vector<1x128xf32> to vector<16x128xf32>
    %17 = arith.addf %14, %16 : vector<16x128xf32>
    %c0_15 = arith.constant 0 : index
    %c0_16 = arith.constant 0 : index
    %18 = vector.load %arg8[%c0_15, %c0_16] : memref<16x128xf32, #tpu.memory_space<vmem>>, vector<16x128xf32>
    tpu.vector_store %arg8[%c0_15, %c0_16], %17 {strides = array<i32>} : memref<16x128xf32, #tpu.memory_space<vmem>>, vector<16x128xf32>,
    return
  }
  func.func @transform_0(%arg0: i32) -> (i32, i32) {
    %c0_i32 = arith.constant 0 : i32
    %c0_i32_0 = arith.constant 0 : i32
    return %arg0, %c0_i32 : i32, i32
  }
  func.func @transform_1(%arg0: i32) -> (i32, i32) {
    %c0_i32 = arith.constant 0 : i32
    %c0_i32_0 = arith.constant 0 : i32
    %c0_i32_1 = arith.constant 0 : i32
    return %c0_i32, %c0_i32_0 : i32, i32
  }
  func.func @transform_2(%arg0: i32) -> (i32, i32) {
    %c0_i32 = arith.constant 0 : i32
    %c0_i32_0 = arith.constant 0 : i32
    %c0_i32_1 = arith.constant 0 : i32
    return %c0_i32, %c0_i32_0 : i32, i32
  }
  func.func @transform_3(%arg0: i32) -> (i32, i32) {
    %c0_i32 = arith.constant 0 : i32
    %c0_i32_0 = arith.constant 0 : i32
    %c0_i32_1 = arith.constant 0 : i32
    return %c0_i32, %c0_i32_0 : i32, i32
  }
  func.func @transform_4(%arg0: i32) -> (i32, i32) {
    %c0_i32 = arith.constant 0 : i32
    %c0_i32_0 = arith.constant 0 : i32
    %c0_i32_1 = arith.constant 0 : i32
    return %c0_i32, %c0_i32_0 : i32, i32
  }
  func.func @transform_5(%arg0: i32) -> (i32, i32) {
    %c0_i32 = arith.constant 0 : i32
    %c0_i32_0 = arith.constant 0 : i32
    %c0_i32_1 = arith.constant 0 : i32
    return %c0_i32, %c0_i32_0 : i32, i32
  }
  func.func @transform_6(%arg0: i32) -> (i32, i32) {
    %c0_i32 = arith.constant 0 : i32
    %c0_i32_0 = arith.constant 0 : i32
    %c0_i32_1 = arith.constant 0 : i32
    return %c0_i32, %c0_i32_0 : i32, i32
  }
  func.func @transform_7(%arg0: i32) -> (i32, i32) {
    %c0_i32 = arith.constant 0 : i32
    %c0_i32_0 = arith.constant 0 : i32
    return %arg0, %c0_i32 : i32, i32
  }
}

module attributes {stable_mosaic.version = 11 : i64} {
  func.func @ddpg_actor_kernel(%arg0: i32, %arg1: memref<16x16xf32, #tpu.memory_space<vmem>>, %arg2: memref<16x128xf32, #tpu.memory_space<vmem>>, %arg3: memref<1x128xf32, #tpu.memory_space<vmem>>, %arg4: memref<128x128xf32, #tpu.memory_space<vmem>>, %arg5: memref<1x128xf32, #tpu.memory_space<vmem>>, %arg6: memref<128x128xf32, #tpu.memory_space<vmem>>, %arg7: memref<1x128xf32, #tpu.memory_space<vmem>>, %arg8: memref<16x128xf32, #tpu.memory_space<vmem>>) attributes {dimension_semantics = [#tpu.dimension_semantics<parallel>], iteration_bounds = array<i64: 1>, scalar_prefetch = 0 : i64, scratch_operands = 0 : i64, tpu.core_type = #tpu.core_type<tc>, window_params = [{transform_indices = @transform_0, window_bounds = array<i64: 16, 16>}, {pipeline_mode = #tpu.pipeline_mode<synchronous>, transform_indices = @transform_1, window_bounds = array<i64: 16, 128>}, {pipeline_mode = #tpu.pipeline_mode<synchronous>, transform_indices = @transform_2, window_bounds = array<i64: 1, 128>}, {pipeline_mode = #tpu.pipeline_mode<synchronous>, transform_indices = @transform_3, window_bounds = array<i64: 128, 128>}, {pipeline_mode = #tpu.pipeline_mode<synchronous>, transform_indices = @transform_4, window_bounds = array<i64: 1, 128>}, {pipeline_mode = #tpu.pipeline_mode<synchronous>, transform_indices = @transform_5, window_bounds = array<i64: 128, 128>}, {pipeline_mode = #tpu.pipeline_mode<synchronous>, transform_indices = @transform_6, window_bounds = array<i64: 1, 128>}, {transform_indices = @transform_7, window_bounds = array<i64: 16, 128>}]} {
    %c0 = arith.constant 0 : index
    %c0_0 = arith.constant 0 : index
    %0 = vector.load %arg1[%c0, %c0_0] : memref<16x16xf32, #tpu.memory_space<vmem>>, vector<16x16xf32>
    %c0_1 = arith.constant 0 : index
    %c0_2 = arith.constant 0 : index
    %1 = vector.load %arg2[%c0_1, %c0_2] : memref<16x128xf32, #tpu.memory_space<vmem>>, vector<16x128xf32>
    %cst = arith.constant dense<0.000000e+00> : vector<16x128xf32>
    %2 = tpu.matmul %0, %1, %cst {dimension_numbers = #tpu.dot_dimension_numbers<[1], [0], [0], [1], [0, 0, 1, 1], [], []>} : vector<16x16xf32>, vector<16x128xf32>, vector<16x128xf32> -> vector<16x128xf32>
    %c0_3 = arith.constant 0 : index
    %c0_4 = arith.constant 0 : index
    %3 = vector.load %arg3[%c0_3, %c0_4] : memref<1x128xf32, #tpu.memory_space<vmem>>, vector<1x128xf32>
    %4 = vector.broadcast %3 : vector<1x128xf32> to vector<16x128xf32>
    %5 = arith.addf %2, %4 : vector<16x128xf32>
    %6 = math.tanh %5 : vector<16x128xf32>
    %c0_5 = arith.constant 0 : index
    %c0_6 = arith.constant 0 : index
    %7 = vector.load %arg4[%c0_5, %c0_6] : memref<128x128xf32, #tpu.memory_space<vmem>>, vector<128x128xf32>
    %cst_7 = arith.constant dense<0.000000e+00> : vector<16x128xf32>
    %8 = tpu.matmul %6, %7, %cst_7 {dimension_numbers = #tpu.dot_dimension_numbers<[1], [0], [0], [1], [0, 0, 1, 1], [], []>} : vector<16x128xf32>, vector<128x128xf32>, vector<16x128xf32> -> vector<16x128xf32>
    %c0_8 = arith.constant 0 : index
    %c0_9 = arith.constant 0 : index
    %9 = vector.load %arg5[%c0_8, %c0_9] : memref<1x128xf32, #tpu.memory_space<vmem>>, vector<1x128xf32>
    %10 = vector.broadcast %9 : vector<1x128xf32> to vector<16x128xf32>
    %11 = arith.addf %8, %10 : vector<16x128xf32>
    %12 = math.tanh %11 : vector<16x128xf32>
    %c0_10 = arith.constant 0 : index
    %c0_11 = arith.constant 0 : index
    %13 = vector.load %arg6[%c0_10, %c0_11] : memref<128x128xf32, #tpu.memory_space<vmem>>, vector<128x128xf32>
    %cst_12 = arith.constant dense<0.000000e+00> : vector<16x128xf32>
    %14 = tpu.matmul %12, %13, %cst_12 {dimension_numbers = #tpu.dot_dimension_numbers<[1], [0], [0], [1], [0, 0, 1, 1], [], []>} : vector<16x128xf32>, vector<128x128xf32>, vector<16x128xf32> -> vector<16x128xf32>
    %c0_13 = arith.constant 0 : index
    %c0_14 = arith.constant 0 : index
    %15 = vector.load %arg7[%c0_13, %c0_14] : memref<1x128xf32, #tpu.memory_space<vmem>>, vector<1x128xf32>
    %16 = vector.broadcast %15 : vector<1x128xf32> to vector<16x128xf32>
    %17 = arith.addf %14, %16 : vector<16x128xf32>
    %c0_15 = arith.constant 0 : index
    %c0_16 = arith.constant 0 : index
    %18 = vector.load %arg8[%c0_15, %c0_16] : memref<16x128xf32, #tpu.memory_space<vmem>>, vector<16x128xf32>
    tpu.vector_store %arg8[%c0_15, %c0_16], %17 {strides = array<i32>} : memref<16x128xf32, #tpu.memory_space<vmem>>, vector<16x128xf32>,
    return
  }
  func.func @transform_0(%arg0: i32) -> (i32, i32) {
    %c0_i32 = arith.constant 0 : i32
    %c0_i32_0 = arith.constant 0 : i32
    return %arg0, %c0_i32 : i32, i32
  }
  func.func @transform_1(%arg0: i32) -> (i32, i32) {
    %c0_i32 = arith.constant 0 : i32
    %c0_i32_0 = arith.constant 0 : i32
    %c0_i32_1 = arith.constant 0 : i32
    return %c0_i32, %c0_i32_0 : i32, i32
  }
  func.func @transform_2(%arg0: i32) -> (i32, i32) {
    %c0_i32 = arith.constant 0 : i32
    %c0_i32_0 = arith.constant 0 : i32
    %c0_i32_1 = arith.constant 0 : i32
    return %c0_i32, %c0_i32_0 : i32, i32
  }
  func.func @transform_3(%arg0: i32) -> (i32, i32) {
    %c0_i32 = arith.constant 0 : i32
    %c0_i32_0 = arith.constant 0 : i32
    %c0_i32_1 = arith.constant 0 : i32
    return %c0_i32, %c0_i32_0 : i32, i32
  }
  func.func @transform_4(%arg0: i32) -> (i32, i32) {
    %c0_i32 = arith.constant 0 : i32
    %c0_i32_0 = arith.constant 0 : i32
    %c0_i32_1 = arith.constant 0 : i32
    return %c0_i32, %c0_i32_0 : i32, i32
  }
  func.func @transform_5(%arg0: i32) -> (i32, i32) {
    %c0_i32 = arith.constant 0 : i32
    %c0_i32_0 = arith.constant 0 : i32
    %c0_i32_1 = arith.constant 0 : i32
    return %c0_i32, %c0_i32_0 : i32, i32
  }
  func.func @transform_6(%arg0: i32) -> (i32, i32) {
    %c0_i32 = arith.constant 0 : i32
    %c0_i32_0 = arith.constant 0 : i32
    %c0_i32_1 = arith.constant 0 : i32
    return %c0_i32, %c0_i32_0 : i32, i32
  }
  func.func @transform_7(%arg0: i32) -> (i32, i32) {
    %c0_i32 = arith.constant 0 : i32
    %c0_i32_0 = arith.constant 0 : i32
    return %arg0, %c0_i32 : i32, i32
  }
}

</mosaic_0001>

<bundles_post_ra>
// kernel: tpu_custom_call.1
= control target key start
LH: loop header
LB: loop body
LE: loop exit
PB: predicated region body
PF: predicated region fallthrough
CT: control target
= control target key end

     0   :  { %12 = vsyncpa [#allocation3], 0  ;;  %s509_s0 = inlined_call_operand.hbm [shape: f32[16,16], index: 0, kind: input, shape index: {}]   ;;  %s510_s1 = inlined_call_operand.hbm [shape: f32[16,128], index: 1, kind: input, shape index: {}]   ;;  %s511_s2 = inlined_call_operand.vmem [shape: f32[1,128], index: 2, kind: input, shape index: {}]   ;;  %s512_s3 = inlined_call_operand.hbm [shape: f32[128,128], index: 3, kind: input, shape index: {}]   ;;  %s513_s4 = inlined_call_operand.vmem [shape: f32[1,128], index: 4, kind: input, shape index: {}]   ;;  %s514_s5 = inlined_call_operand.hbm [shape: f32[128,128], index: 5, kind: input, shape index: {}]   ;;  %s515_s6 = inlined_call_operand.vmem [shape: f32[1,128], index: 6, kind: input, shape index: {}]   ;;  %s516_s7 = inlined_call_operand.hbm [shape: f32[16,128], index: 7, kind: output, shape index: {}]  }
   0x1   :  { %13 = vsyncpa [#allocation6], 0 }
   0x2   :  { %14 = vsyncpa [#allocation9], 0 }
   0x3   :  { %15 = vsyncpa [#allocation4], 0  ;;  %s33_s26 = sshll.u32 %s510_s1, 4  ;;  %s421_s27 = smov [#allocation5]   ;;  %s34_s26 = int_to_ptr.hbm [resolvable:$true] %s33_s26 }
   0x4   :  { %s35_s28 = sshll.u32 %s421_s27, 4  ;;  %s20_s8 = sshll.u32 %s509_s0, 4  ;;  %s36_s28 = int_to_ptr.vmem [resolvable:$true] %s35_s28  ;;  %s21_s8 = int_to_ptr.hbm [resolvable:$true] %s20_s8 }
   0x5   :  { %s422_s9 = smov 128   ;;  %s423_s10 = smov 8  }
   0x6   :  { %41 = dma.hbm_to_vmem [thread:$0]  %s34_s26, 256, %s36_s28, [#allocation6], %s422_s9, %s422_s9, %s423_s10  }
   0x7   :  { %s424_s11 = smov [#allocation2]   ;;  %s48_s1 = sshll.u32 %s512_s3, 4  ;;  %s49_s1 = int_to_ptr.hbm [resolvable:$true] %s48_s1 }
   0x8   :  { %s22_s12 = sshll.u32 %s424_s11, 4  ;;  %s63_s16 = sshll.u32 %s514_s5, 4  ;;  %s23_s12 = int_to_ptr.vmem [resolvable:$true] %s22_s12  ;;  %s64_s16 = int_to_ptr.hbm [resolvable:$true] %s63_s16 }
   0x9   :  { %28 = dma.hbm_to_vmem [thread:$0]  %s21_s8, 256, %s23_s12, [#allocation3], %s422_s9, %s422_s9, %s423_s10  }
   0xa   :  { %s425_s17 = smov [#allocation7]   ;;  %s426_s19 = smov [#allocation8]  }
   0xb   :  { %s50_s18 = sshll.u32 %s425_s17, 4  ;;  %s65_s3 = sshll.u32 %s426_s19, 4  ;;  %s51_s18 = int_to_ptr.vmem [resolvable:$true] %s50_s18  ;;  %s66_s3 = int_to_ptr.vmem [resolvable:$true] %s65_s3 }
   0xc   :  { %56 = dma.hbm_to_vmem [thread:$0]  %s49_s1, 2048, %s51_s18, [#allocation6], %s422_s9, %s422_s9, %s423_s10  }
   0xd   :  { %71 = dma.hbm_to_vmem [thread:$0]  %s64_s16, 2048, %s66_s3, [#allocation9], %s422_s9, %s422_s9, %s423_s10  }
   0xe   :  { %413 = dma.done.wait [#allocation3], 256  }
   0xf   :  { %414 = vsyncadd [#allocation3], 4294967040 }
  0x10   :  { %415 = dma.done.wait [#allocation6], 2304  }
  0x11   :  { %416 = vsyncadd [#allocation6], 4294964992 }
  0x12   :  { %417 = dma.done.wait [#allocation9], 2048  }
  0x13   :  { %418 = vsyncadd [#allocation9], 4294965248  ;;  %v93_v0 = vld [vmem:[#allocation5 + $0x8] sm:$0xff]  ;;  %v92_v1 = vld [vmem:[#allocation5] sm:$0xff]  ;;  %vm98_vm0 = vcmask 130048   ;;  %s427_s24 = smov [#allocation10]  }
  0x14   :  { %119 = vmatpush.msra.mxu0 %v93_v0  ;;  %v90_v2 = vld [vmem:[#allocation2] sm:$0xff]  ;;  %v145_v3 = vld [vmem:[#allocation7 + $0x78] sm:$0xff]  ;;  %v144_v4 = vld [vmem:[#allocation7 + $0x70] sm:$0xff]  ;;  %s224_s25 = sshll.u32 %s427_s24, 4  ;;  %s226_s27 = sshll.u32 %s516_s7, 4  ;;  %s225_s25 = int_to_ptr.vmem [resolvable:$true] %s224_s25  ;;  %s227_s27 = int_to_ptr.hbm [resolvable:$true] %s226_s27 }
  0x15   :  { %150 = vmatpush.msra.mxu1 %v145_v3  ;;  %243 = vmatpush.msra.mxu3 %v145_v3  ;;  %v143_v5 = vld [vmem:[#allocation7 + $0x68] sm:$0xff]  ;;  %v142_v6 = vld [vmem:[#allocation7 + $0x60] sm:$0xff]  ;;  %v141_v7 = vld [vmem:[#allocation7 + $0x58] sm:$0xff] }
  0x16   :  { %120 = vmatpush.msra.mxu0 %v92_v1  ;;  %v91_v8 = vld [vmem:[#allocation2 + $0x8] sm:$0xff]  ;;  %v140_v9 = vld [vmem:[#allocation7 + $0x50] sm:$0xff]  ;;  %v138_v11 = vld [vmem:[#allocation7 + $0x40] sm:$0xff] }
  0x17   :  { %241 = vmatmul.msk.f32.vlgmr.msra.gmra.mxu0 %vm98_vm0, %v90_v2  ;;  %151 = vmatpush.msra.mxu1 %v144_v4  ;;  %v139_v10 = vld [vmem:[#allocation7 + $0x48] sm:$0xff]  ;;  %v137_v12 = vld [vmem:[#allocation7 + $0x38] sm:$0xff]  ;;  %v136_v13 = vld [vmem:[#allocation7 + $0x30] sm:$0xff] }
  0x18   :  { %244 = vmatpush.msra.mxu3 %v144_v4  ;;  %v135_v14 = vld [vmem:[#allocation7 + $0x28] sm:$0xff]  ;;  %v134_v15 = vld [vmem:[#allocation7 + $0x20] sm:$0xff]  ;;  %v133_v16 = vld [vmem:[#allocation7 + $0x18] sm:$0xff] }
  0x19   :  { %152 = vmatpush.msra.mxu1 %v143_v5  ;;  %v132_v17 = vld [vmem:[#allocation7 + $0x10] sm:$0xff]  ;;  %v131_v18 = vld [vmem:[#allocation7 + $0x8] sm:$0xff]  ;;  %v130_v19 = vld [vmem:[#allocation7] sm:$0xff] }
  0x1a   :  { %245 = vmatpush.msra.mxu3 %v143_v5  ;;  %v190_v20 = vld [vmem:[#allocation8 + $0x78] sm:$0xff]  ;;  %v189_v21 = vld [vmem:[#allocation8 + $0x70] sm:$0xff]  ;;  %v188_v22 = vld [vmem:[#allocation8 + $0x68] sm:$0xff] }
  0x1b   :  { %153 = vmatpush.msra.mxu1 %v142_v6  ;;  %195 = vmatpush.msrb.mxu0 %v190_v20  ;;  %v187_v23 = vld [vmem:[#allocation8 + $0x60] sm:$0xff]  ;;  %v186_v24 = vld [vmem:[#allocation8 + $0x58] sm:$0xff]  ;;  %v185_v25 = vld [vmem:[#allocation8 + $0x50] sm:$0xff] }
  0x1c   :  { %246 = vmatpush.msra.mxu3 %v142_v6  ;;  %259 = vmatpush.msra.mxu2 %v190_v20  ;;  %v184_v26 = vld [vmem:[#allocation8 + $0x48] sm:$0xff]  ;;  %v282_v27 = vld [vmem:[%s511_s2] ss:$0 sm:$0xff]  ;;  %v182_v30 = vld [vmem:[#allocation8 + $0x38] sm:$0xff] }
  0x1d   :  { %154 = vmatpush.msra.mxu1 %v141_v7  ;;  %196 = vmatpush.msrb.mxu0 %v189_v21  ;;  %v183_v28 = vld [vmem:[#allocation8 + $0x40] sm:$0xff]  ;;  %v181_v32 = vld [vmem:[#allocation8 + $0x30] sm:$0xff]  ;;  %v180_v33 = vld [vmem:[#allocation8 + $0x28] sm:$0xff] }
  0x1e   :  { %247 = vmatpush.msra.mxu3 %v141_v7  ;;  %260 = vmatpush.msra.mxu2 %v189_v21  ;;  %v179_v38 = vld [vmem:[#allocation8 + $0x20] sm:$0xff]  ;;  %v178_v39 = vld [vmem:[#allocation8 + $0x18] sm:$0xff]  ;;  %v177_v40 = vld [vmem:[#allocation8 + $0x10] sm:$0xff] }
  0x1f   :  { %242 = vmatmul.msk.f32.gmra.mxu0 %vm98_vm0, %v91_v8  ;;  %155 = vmatpush.msra.mxu1 %v140_v9  ;;  %v176_v41 = vld [vmem:[#allocation8 + $0x8] sm:$0xff]  ;;  %v175_v42 = vld [vmem:[#allocation8] sm:$0xff] }
  0x20   :  { %248 = vmatpush.msra.mxu3 %v140_v9  ;;  %197 = vmatpush.msrb.mxu0 %v188_v22  ;;  %v283_v43 = vld [vmem:[%s513_s4] ss:$0 sm:$0xff] }
  0x21   :  { %156 = vmatpush.msra.mxu1 %v139_v10  ;;  %261 = vmatpush.msra.mxu2 %v188_v22  ;;  %v284_v50 = vld [vmem:[%s515_s6] ss:$0 sm:$0xff] }
  0x22   :  { %249 = vmatpush.msra.mxu3 %v139_v10  ;;  %198 = vmatpush.msrb.mxu0 %v187_v23 }
  0x23   :  { %157 = vmatpush.msra.mxu1 %v138_v11  ;;  %262 = vmatpush.msra.mxu2 %v187_v23 }
  0x24   :  { %250 = vmatpush.msra.mxu3 %v138_v11  ;;  %199 = vmatpush.msrb.mxu0 %v186_v24 }
  0x25   :  { %158 = vmatpush.msra.mxu1 %v137_v12  ;;  %263 = vmatpush.msra.mxu2 %v186_v24 }
  0x26   :  { %251 = vmatpush.msra.mxu3 %v137_v12  ;;  %200 = vmatpush.msrb.mxu0 %v185_v25 }
  0x27   :  { %159 = vmatpush.msra.mxu1 %v136_v13  ;;  %264 = vmatpush.msra.mxu2 %v185_v25 }
  0x28   :  { %252 = vmatpush.msra.mxu3 %v136_v13  ;;  %201 = vmatpush.msrb.mxu0 %v184_v26 }
  0x29   :  { %160 = vmatpush.msra.mxu1 %v135_v14  ;;  %265 = vmatpush.msra.mxu2 %v184_v26 }
  0x2a   :  { %253 = vmatpush.msra.mxu3 %v135_v14  ;;  %202 = vmatpush.msrb.mxu0 %v183_v28 }
  0x2b   :  { %161 = vmatpush.msra.mxu1 %v134_v15  ;;  %266 = vmatpush.msra.mxu2 %v183_v28 }
  0x2c   :  { %254 = vmatpush.msra.mxu3 %v134_v15  ;;  %203 = vmatpush.msrb.mxu0 %v182_v30 }
  0x2d   :  { %162 = vmatpush.msra.mxu1 %v133_v16  ;;  %267 = vmatpush.msra.mxu2 %v182_v30 }
  0x2e   :  { %255 = vmatpush.msra.mxu3 %v133_v16  ;;  %204 = vmatpush.msrb.mxu0 %v181_v32 }
  0x2f   :  { %163 = vmatpush.msra.mxu1 %v132_v17  ;;  %268 = vmatpush.msra.mxu2 %v181_v32 }
  0x30   :  { %256 = vmatpush.msra.mxu3 %v132_v17  ;;  %205 = vmatpush.msrb.mxu0 %v180_v33 }
  0x31   :  { %164 = vmatpush.msra.mxu1 %v131_v18  ;;  %269 = vmatpush.msra.mxu2 %v180_v33 }
  0x32   :  { %257 = vmatpush.msra.mxu3 %v131_v18  ;;  %206 = vmatpush.msrb.mxu0 %v179_v38 }
  0x33   :  { %165 = vmatpush.msra.mxu1 %v130_v19  ;;  %270 = vmatpush.msra.mxu2 %v179_v38 }
  0x34   :  { %258 = vmatpush.msra.mxu3 %v130_v19  ;;  %207 = vmatpush.msrb.mxu0 %v178_v39 }
  0x35   :  { %271 = vmatpush.msra.mxu2 %v178_v39 }
  0x36   :  { %208 = vmatpush.msrb.mxu0 %v177_v40 }
  0x37   :  { %272 = vmatpush.msra.mxu2 %v177_v40 }
  0x38   :  { %209 = vmatpush.msrb.mxu0 %v176_v41 }
  0x39   :  { %273 = vmatpush.msra.mxu2 %v176_v41 }
  0x3a   :  { %210 = vmatpush.msrb.mxu0 %v175_v42 }
  0x3b   :  { %274 = vmatpush.msra.mxu2 %v175_v42 }
  0x94   :  { %v122_v29 = vpop.f32.mrf.mxu0 }
  0x95   :  { %v123_v31 = vadd.f32 %v282_v27, %v122_v29 }
  0x97   :  { %285 = vtanh.f32 %v123_v31 }
  0x9c   :  { %v125_v34 = vpop.f32.mrf.mxu0 }
  0x9d   :  { %v286_v35 = vpop.eup %285  ;;  %v126_v36 = vadd.f32 %v282_v27, %v125_v34 }
  0x9e   :  { %166 = vmatmul.f32.vlgmr.msra.gmra.mxu1 %v286_v35 }
  0x9f   :  { %287 = vtanh.f32 %v126_v36 }
  0xa5   :  { %v288_v37 = vpop.eup %287 }
  0xa6   :  { %169 = vmatmul.f32.vlgmr.msra.gmra.mxu3 %v288_v37 }
 0x11b   :  { %v167_v44 = vpop.f32.mrf.mxu1 }
 0x11c   :  { %v168_v45 = vadd.f32 %v283_v43, %v167_v44 }
 0x11e   :  { %289 = vtanh.f32 %v168_v45 }
 0x124   :  { %v290_v46 = vpop.eup %289 }
 0x125   :  { %211 = vmatmul.f32.vlgmr.msrb.gmra.mxu0 %v290_v46 }
 0x129   :  { %v170_v47 = vpop.f32.mrf.mxu3 }
 0x12a   :  { %v171_v48 = vadd.f32 %v283_v43, %v170_v47 }
 0x12c   :  { %291 = vtanh.f32 %v171_v48 }
 0x132   :  { %v292_v49 = vpop.eup %291 }
 0x133   :  { %214 = vmatmul.f32.vlgmr.msra.gmra.mxu2 %v292_v49 }
 0x1a2   :  { %v212_v51 = vpop.f32.mrf.mxu0 }
 0x1a3   :  { %v213_v52 = vadd.f32 %v284_v50, %v212_v51 }
 0x1a5   :  { %218 = vst [vmem:[#allocation10] sm:$0xff] %v213_v52 }
 0x1b6   :  { %v215_v53 = vpop.f32.mrf.mxu2 }
 0x1b7   :  { %v216_v54 = vadd.f32 %v284_v50, %v215_v53 }
 0x1b9   :  { %219 = vst [vmem:[#allocation10 + $0x8] sm:$0xff] %v216_v54 }
 0x1ba   :  { %232 = dma.vmem_to_hbm [thread:$0]  %s225_s25, 256, %s227_s27, [#allocation4], %s422_s9, %s422_s9, %s423_s10  }
 0x1bb   :  { %419 = dma.done.wait [#allocation4], 256  }
 0x1bc   :  { %420 = vsyncadd [#allocation4], 4294967040 }
 0x1bd   :  { %237 = vsyncpa [#allocation3], 1 }
 0x1be   :  { %238 = vsyncpa [#allocation6], 1 }
 0x1bf   :  { %239 = vsyncpa [#allocation9], 1 }
 0x1c0   :  { %240 = vsyncpa [#allocation4], 1 }

// kernel: tpu_custom_call.1
= control target key start
LH: loop header
LB: loop body
LE: loop exit
PB: predicated region body
PF: predicated region fallthrough
CT: control target
= control target key end

     0   :  { %12 = vsyncpa [#allocation3], 0  ;;  %s509_s0 = inlined_call_operand.hbm [shape: f32[16,16], index: 0, kind: input, shape index: {}]   ;;  %s510_s1 = inlined_call_operand.hbm [shape: f32[16,128], index: 1, kind: input, shape index: {}]   ;;  %s511_s2 = inlined_call_operand.vmem [shape: f32[1,128], index: 2, kind: input, shape index: {}]   ;;  %s512_s3 = inlined_call_operand.hbm [shape: f32[128,128], index: 3, kind: input, shape index: {}]   ;;  %s513_s4 = inlined_call_operand.vmem [shape: f32[1,128], index: 4, kind: input, shape index: {}]   ;;  %s514_s5 = inlined_call_operand.hbm [shape: f32[128,128], index: 5, kind: input, shape index: {}]   ;;  %s515_s6 = inlined_call_operand.vmem [shape: f32[1,128], index: 6, kind: input, shape index: {}]   ;;  %s516_s7 = inlined_call_operand.hbm [shape: f32[16,128], index: 7, kind: output, shape index: {}]  }
   0x1   :  { %13 = vsyncpa [#allocation6], 0 }
   0x2   :  { %14 = vsyncpa [#allocation9], 0 }
   0x3   :  { %15 = vsyncpa [#allocation4], 0  ;;  %s33_s26 = sshll.u32 %s510_s1, 4  ;;  %s421_s27 = smov [#allocation5]   ;;  %s34_s26 = int_to_ptr.hbm [resolvable:$true] %s33_s26 }
   0x4   :  { %s35_s28 = sshll.u32 %s421_s27, 4  ;;  %s20_s8 = sshll.u32 %s509_s0, 4  ;;  %s36_s28 = int_to_ptr.vmem [resolvable:$true] %s35_s28  ;;  %s21_s8 = int_to_ptr.hbm [resolvable:$true] %s20_s8 }
   0x5   :  { %s422_s9 = smov 128   ;;  %s423_s10 = smov 8  }
   0x6   :  { %41 = dma.hbm_to_vmem [thread:$0]  %s34_s26, 256, %s36_s28, [#allocation6], %s422_s9, %s422_s9, %s423_s10  }
   0x7   :  { %s424_s11 = smov [#allocation2]   ;;  %s48_s1 = sshll.u32 %s512_s3, 4  ;;  %s49_s1 = int_to_ptr.hbm [resolvable:$true] %s48_s1 }
   0x8   :  { %s22_s12 = sshll.u32 %s424_s11, 4  ;;  %s63_s16 = sshll.u32 %s514_s5, 4  ;;  %s23_s12 = int_to_ptr.vmem [resolvable:$true] %s22_s12  ;;  %s64_s16 = int_to_ptr.hbm [resolvable:$true] %s63_s16 }
   0x9   :  { %28 = dma.hbm_to_vmem [thread:$0]  %s21_s8, 256, %s23_s12, [#allocation3], %s422_s9, %s422_s9, %s423_s10  }
   0xa   :  { %s425_s17 = smov [#allocation7]   ;;  %s426_s19 = smov [#allocation8]  }
   0xb   :  { %s50_s18 = sshll.u32 %s425_s17, 4  ;;  %s65_s3 = sshll.u32 %s426_s19, 4  ;;  %s51_s18 = int_to_ptr.vmem [resolvable:$true] %s50_s18  ;;  %s66_s3 = int_to_ptr.vmem [resolvable:$true] %s65_s3 }
   0xc   :  { %56 = dma.hbm_to_vmem [thread:$0]  %s49_s1, 2048, %s51_s18, [#allocation6], %s422_s9, %s422_s9, %s423_s10  }
   0xd   :  { %71 = dma.hbm_to_vmem [thread:$0]  %s64_s16, 2048, %s66_s3, [#allocation9], %s422_s9, %s422_s9, %s423_s10  }
   0xe   :  { %413 = dma.done.wait [#allocation3], 256  }
   0xf   :  { %414 = vsyncadd [#allocation3], 4294967040 }
  0x10   :  { %415 = dma.done.wait [#allocation6], 2304  }
  0x11   :  { %416 = vsyncadd [#allocation6], 4294964992 }
  0x12   :  { %417 = dma.done.wait [#allocation9], 2048  }
  0x13   :  { %418 = vsyncadd [#allocation9], 4294965248  ;;  %v93_v0 = vld [vmem:[#allocation5 + $0x8] sm:$0xff]  ;;  %v92_v1 = vld [vmem:[#allocation5] sm:$0xff]  ;;  %vm98_vm0 = vcmask 130048   ;;  %s427_s24 = smov [#allocation10]  }
  0x14   :  { %119 = vmatpush.msra.mxu0 %v93_v0  ;;  %v90_v2 = vld [vmem:[#allocation2] sm:$0xff]  ;;  %v145_v3 = vld [vmem:[#allocation7 + $0x78] sm:$0xff]  ;;  %v144_v4 = vld [vmem:[#allocation7 + $0x70] sm:$0xff]  ;;  %s224_s25 = sshll.u32 %s427_s24, 4  ;;  %s226_s27 = sshll.u32 %s516_s7, 4  ;;  %s225_s25 = int_to_ptr.vmem [resolvable:$true] %s224_s25  ;;  %s227_s27 = int_to_ptr.hbm [resolvable:$true] %s226_s27 }
  0x15   :  { %150 = vmatpush.msra.mxu1 %v145_v3  ;;  %243 = vmatpush.msra.mxu3 %v145_v3  ;;  %v143_v5 = vld [vmem:[#allocation7 + $0x68] sm:$0xff]  ;;  %v142_v6 = vld [vmem:[#allocation7 + $0x60] sm:$0xff]  ;;  %v141_v7 = vld [vmem:[#allocation7 + $0x58] sm:$0xff] }
  0x16   :  { %120 = vmatpush.msra.mxu0 %v92_v1  ;;  %v91_v8 = vld [vmem:[#allocation2 + $0x8] sm:$0xff]  ;;  %v140_v9 = vld [vmem:[#allocation7 + $0x50] sm:$0xff]  ;;  %v138_v11 = vld [vmem:[#allocation7 + $0x40] sm:$0xff] }
  0x17   :  { %241 = vmatmul.msk.f32.vlgmr.msra.gmra.mxu0 %vm98_vm0, %v90_v2  ;;  %151 = vmatpush.msra.mxu1 %v144_v4  ;;  %v139_v10 = vld [vmem:[#allocation7 + $0x48] sm:$0xff]  ;;  %v137_v12 = vld [vmem:[#allocation7 + $0x38] sm:$0xff]  ;;  %v136_v13 = vld [vmem:[#allocation7 + $0x30] sm:$0xff] }
  0x18   :  { %244 = vmatpush.msra.mxu3 %v144_v4  ;;  %v135_v14 = vld [vmem:[#allocation7 + $0x28] sm:$0xff]  ;;  %v134_v15 = vld [vmem:[#allocation7 + $0x20] sm:$0xff]  ;;  %v133_v16 = vld [vmem:[#allocation7 + $0x18] sm:$0xff] }
  0x19   :  { %152 = vmatpush.msra.mxu1 %v143_v5  ;;  %v132_v17 = vld [vmem:[#allocation7 + $0x10] sm:$0xff]  ;;  %v131_v18 = vld [vmem:[#allocation7 + $0x8] sm:$0xff]  ;;  %v130_v19 = vld [vmem:[#allocation7] sm:$0xff] }
  0x1a   :  { %245 = vmatpush.msra.mxu3 %v143_v5  ;;  %v190_v20 = vld [vmem:[#allocation8 + $0x78] sm:$0xff]  ;;  %v189_v21 = vld [vmem:[#allocation8 + $0x70] sm:$0xff]  ;;  %v188_v22 = vld [vmem:[#allocation8 + $0x68] sm:$0xff] }
  0x1b   :  { %153 = vmatpush.msra.mxu1 %v142_v6  ;;  %195 = vmatpush.msrb.mxu0 %v190_v20  ;;  %v187_v23 = vld [vmem:[#allocation8 + $0x60] sm:$0xff]  ;;  %v186_v24 = vld [vmem:[#allocation8 + $0x58] sm:$0xff]  ;;  %v185_v25 = vld [vmem:[#allocation8 + $0x50] sm:$0xff] }
  0x1c   :  { %246 = vmatpush.msra.mxu3 %v142_v6  ;;  %259 = vmatpush.msra.mxu2 %v190_v20  ;;  %v184_v26 = vld [vmem:[#allocation8 + $0x48] sm:$0xff]  ;;  %v282_v27 = vld [vmem:[%s511_s2] ss:$0 sm:$0xff]  ;;  %v182_v30 = vld [vmem:[#allocation8 + $0x38] sm:$0xff] }
  0x1d   :  { %154 = vmatpush.msra.mxu1 %v141_v7  ;;  %196 = vmatpush.msrb.mxu0 %v189_v21  ;;  %v183_v28 = vld [vmem:[#allocation8 + $0x40] sm:$0xff]  ;;  %v181_v32 = vld [vmem:[#allocation8 + $0x30] sm:$0xff]  ;;  %v180_v33 = vld [vmem:[#allocation8 + $0x28] sm:$0xff] }
  0x1e   :  { %247 = vmatpush.msra.mxu3 %v141_v7  ;;  %260 = vmatpush.msra.mxu2 %v189_v21  ;;  %v179_v38 = vld [vmem:[#allocation8 + $0x20] sm:$0xff]  ;;  %v178_v39 = vld [vmem:[#allocation8 + $0x18] sm:$0xff]  ;;  %v177_v40 = vld [vmem:[#allocation8 + $0x10] sm:$0xff] }
  0x1f   :  { %242 = vmatmul.msk.f32.gmra.mxu0 %vm98_vm0, %v91_v8  ;;  %155 = vmatpush.msra.mxu1 %v140_v9  ;;  %v176_v41 = vld [vmem:[#allocation8 + $0x8] sm:$0xff]  ;;  %v175_v42 = vld [vmem:[#allocation8] sm:$0xff] }
  0x20   :  { %248 = vmatpush.msra.mxu3 %v140_v9  ;;  %197 = vmatpush.msrb.mxu0 %v188_v22  ;;  %v283_v43 = vld [vmem:[%s513_s4] ss:$0 sm:$0xff] }
  0x21   :  { %156 = vmatpush.msra.mxu1 %v139_v10  ;;  %261 = vmatpush.msra.mxu2 %v188_v22  ;;  %v284_v50 = vld [vmem:[%s515_s6] ss:$0 sm:$0xff] }
  0x22   :  { %249 = vmatpush.msra.mxu3 %v139_v10  ;;  %198 = vmatpush.msrb.mxu0 %v187_v23 }
  0x23   :  { %157 = vmatpush.msra.mxu1 %v138_v11  ;;  %262 = vmatpush.msra.mxu2 %v187_v23 }
  0x24   :  { %250 = vmatpush.msra.mxu3 %v138_v11  ;;  %199 = vmatpush.msrb.mxu0 %v186_v24 }
  0x25   :  { %158 = vmatpush.msra.mxu1 %v137_v12  ;;  %263 = vmatpush.msra.mxu2 %v186_v24 }
  0x26   :  { %251 = vmatpush.msra.mxu3 %v137_v12  ;;  %200 = vmatpush.msrb.mxu0 %v185_v25 }
  0x27   :  { %159 = vmatpush.msra.mxu1 %v136_v13  ;;  %264 = vmatpush.msra.mxu2 %v185_v25 }
  0x28   :  { %252 = vmatpush.msra.mxu3 %v136_v13  ;;  %201 = vmatpush.msrb.mxu0 %v184_v26 }
  0x29   :  { %160 = vmatpush.msra.mxu1 %v135_v14  ;;  %265 = vmatpush.msra.mxu2 %v184_v26 }
  0x2a   :  { %253 = vmatpush.msra.mxu3 %v135_v14  ;;  %202 = vmatpush.msrb.mxu0 %v183_v28 }
  0x2b   :  { %161 = vmatpush.msra.mxu1 %v134_v15  ;;  %266 = vmatpush.msra.mxu2 %v183_v28 }
  0x2c   :  { %254 = vmatpush.msra.mxu3 %v134_v15  ;;  %203 = vmatpush.msrb.mxu0 %v182_v30 }
  0x2d   :  { %162 = vmatpush.msra.mxu1 %v133_v16  ;;  %267 = vmatpush.msra.mxu2 %v182_v30 }
  0x2e   :  { %255 = vmatpush.msra.mxu3 %v133_v16  ;;  %204 = vmatpush.msrb.mxu0 %v181_v32 }
  0x2f   :  { %163 = vmatpush.msra.mxu1 %v132_v17  ;;  %268 = vmatpush.msra.mxu2 %v181_v32 }
  0x30   :  { %256 = vmatpush.msra.mxu3 %v132_v17  ;;  %205 = vmatpush.msrb.mxu0 %v180_v33 }
  0x31   :  { %164 = vmatpush.msra.mxu1 %v131_v18  ;;  %269 = vmatpush.msra.mxu2 %v180_v33 }
  0x32   :  { %257 = vmatpush.msra.mxu3 %v131_v18  ;;  %206 = vmatpush.msrb.mxu0 %v179_v38 }
  0x33   :  { %165 = vmatpush.msra.mxu1 %v130_v19  ;;  %270 = vmatpush.msra.mxu2 %v179_v38 }
  0x34   :  { %258 = vmatpush.msra.mxu3 %v130_v19  ;;  %207 = vmatpush.msrb.mxu0 %v178_v39 }
  0x35   :  { %271 = vmatpush.msra.mxu2 %v178_v39 }
  0x36   :  { %208 = vmatpush.msrb.mxu0 %v177_v40 }
  0x37   :  { %272 = vmatpush.msra.mxu2 %v177_v40 }
  0x38   :  { %209 = vmatpush.msrb.mxu0 %v176_v41 }
  0x39   :  { %273 = vmatpush.msra.mxu2 %v176_v41 }
  0x3a   :  { %210 = vmatpush.msrb.mxu0 %v175_v42 }
  0x3b   :  { %274 = vmatpush.msra.mxu2 %v175_v42 }
  0x94   :  { %v122_v29 = vpop.f32.mrf.mxu0 }
  0x95   :  { %v123_v31 = vadd.f32 %v282_v27, %v122_v29 }
  0x97   :  { %285 = vtanh.f32 %v123_v31 }
  0x9c   :  { %v125_v34 = vpop.f32.mrf.mxu0 }
  0x9d   :  { %v286_v35 = vpop.eup %285  ;;  %v126_v36 = vadd.f32 %v282_v27, %v125_v34 }
  0x9e   :  { %166 = vmatmul.f32.vlgmr.msra.gmra.mxu1 %v286_v35 }
  0x9f   :  { %287 = vtanh.f32 %v126_v36 }
  0xa5   :  { %v288_v37 = vpop.eup %287 }
  0xa6   :  { %169 = vmatmul.f32.vlgmr.msra.gmra.mxu3 %v288_v37 }
 0x11b   :  { %v167_v44 = vpop.f32.mrf.mxu1 }
 0x11c   :  { %v168_v45 = vadd.f32 %v283_v43, %v167_v44 }
 0x11e   :  { %289 = vtanh.f32 %v168_v45 }
 0x124   :  { %v290_v46 = vpop.eup %289 }
 0x125   :  { %211 = vmatmul.f32.vlgmr.msrb.gmra.mxu0 %v290_v46 }
 0x129   :  { %v170_v47 = vpop.f32.mrf.mxu3 }
 0x12a   :  { %v171_v48 = vadd.f32 %v283_v43, %v170_v47 }
 0x12c   :  { %291 = vtanh.f32 %v171_v48 }
 0x132   :  { %v292_v49 = vpop.eup %291 }
 0x133   :  { %214 = vmatmul.f32.vlgmr.msra.gmra.mxu2 %v292_v49 }
 0x1a2   :  { %v212_v51 = vpop.f32.mrf.mxu0 }
 0x1a3   :  { %v213_v52 = vadd.f32 %v284_v50, %v212_v51 }
 0x1a5   :  { %218 = vst [vmem:[#allocation10] sm:$0xff] %v213_v52 }
 0x1b6   :  { %v215_v53 = vpop.f32.mrf.mxu2 }
 0x1b7   :  { %v216_v54 = vadd.f32 %v284_v50, %v215_v53 }
 0x1b9   :  { %219 = vst [vmem:[#allocation10 + $0x8] sm:$0xff] %v216_v54 }
 0x1ba   :  { %232 = dma.vmem_to_hbm [thread:$0]  %s225_s25, 256, %s227_s27, [#allocation4], %s422_s9, %s422_s9, %s423_s10  }
 0x1bb   :  { %419 = dma.done.wait [#allocation4], 256  }
 0x1bc   :  { %420 = vsyncadd [#allocation4], 4294967040 }
 0x1bd   :  { %237 = vsyncpa [#allocation3], 1 }
 0x1be   :  { %238 = vsyncpa [#allocation6], 1 }
 0x1bf   :  { %239 = vsyncpa [#allocation9], 1 }
 0x1c0   :  { %240 = vsyncpa [#allocation4], 1 }

</bundles_post_ra>
